<compile_context>
chip_gen: v7x
topology: tpu7x:2x2x1
jax: 0.10.0
libtpu: 0.0.40
codegen_flags: <defaults>
</compile_context>

<pallas_src>
import functools

import jax
import jax.numpy as jnp
from jax.experimental import pallas as pl
from jax.experimental.pallas import tpu as pltpu


def _round_up(x, m):
    return ((x + m - 1) // m) * m


def _pick_node_tile(n):
    # Lane-dense node tiles: multiples of 128; cap at 512 for big graphs so
    # bf16 A tiles (512x512 = 512 KiB) pipeline comfortably within VMEM on all
    # generations (v7x: 64 MiB physical).
    return _round_up(n, 128) if n <= 512 else 512


# ---------------------------------------------------------------------------
# Kernel 1: feature projection  P[b] = H @ Wstk[b]
# ---------------------------------------------------------------------------
def _project_kernel(h_ref, w_ref, o_ref):
    # bf16 MXU matmul, f32 result.
    o_ref[0] = jnp.dot(h_ref[...], w_ref[...], preferred_element_type=jnp.float32)


def project_features(h_pad, w_stacked, *, node_tile):
    """P[b] = H @ W_stacked[b] for every stacked weight (bases + self-loop)."""
    n_pad, d_pad = h_pad.shape
    nb_total = w_stacked.shape[0]
    gi = n_pad // node_tile
    # TODO(synk): tile the d_pad contraction / output dims for very large hidden sizes.
    return pl.pallas_call(
        _project_kernel,
        out_shape=jax.ShapeDtypeStruct((nb_total, n_pad, d_pad), jnp.float32),
        grid_spec=pltpu.PrefetchScalarGridSpec(
            num_scalar_prefetch=0,
            grid=(nb_total, gi),
            in_specs=[
                pl.BlockSpec((node_tile, d_pad), lambda b, i: (i, 0)),       # H tile
                pl.BlockSpec((None, d_pad, d_pad), lambda b, i: (b, 0, 0)),  # Wstk[b]
            ],
            out_specs=pl.BlockSpec((1, node_tile, d_pad), lambda b, i: (b, i, 0)),
        ),
        compiler_params=pltpu.CompilerParams(
            dimension_semantics=("parallel", "parallel"),
            vmem_limit_bytes=48 * 1024 * 1024),
        cost_estimate=pl.CostEstimate(
            flops=2 * nb_total * n_pad * d_pad * d_pad,
            transcendentals=0,
            bytes_accessed=(nb_total * n_pad * d_pad * 2
                            + nb_total * d_pad * d_pad * 2
                            + nb_total * n_pad * d_pad * 4)),
    )(h_pad.astype(jnp.bfloat16), w_stacked.astype(jnp.bfloat16))


# ---------------------------------------------------------------------------
# Kernel 2: relational aggregation with in-kernel basis combine
# ---------------------------------------------------------------------------
def _rgcn_agg_kernel(mask_ref, comp_ref, a_ref, hb_ref, hs_ref, o_ref, acc_ref,
                     *, num_bases, use_self_loop, apply_relu):
    i = pl.program_id(0)          # dst node tile (parallel)
    k = pl.program_id(1)          # src node tile (reduction)
    r = pl.program_id(2)          # relation      (reduction, innermost)
    num_k = pl.num_programs(1)
    num_r = pl.num_programs(2)

    @pl.when((k == 0) & (r == 0))
    def _init():
        if use_self_loop:
            acc_ref[...] = hs_ref[...]            # f32 self-loop term (H @ W_self)
        else:
            acc_ref[...] = jnp.zeros_like(acc_ref)

    # Skip adjacency tiles that are entirely zero (block-sparse graphs). The
    # block is still DMA'd by the BlockSpec, but the MXU/VPU work is skipped.
    @pl.when(mask_ref[r, i * num_k + k] > 0)
    def _accumulate():
        # msg_r = sum_b comp[r, b] * (H @ bases[b])  -- f32 VPU combine with
        # comp scalars read from SMEM; hides under the MXU slot below.
        msg = comp_ref[r, 0] * hb_ref[0]
        for b in range(1, num_bases):
            msg += comp_ref[r, b] * hb_ref[b]
        acc_ref[...] += jnp.dot(a_ref[...], msg.astype(jnp.bfloat16),
                                preferred_element_type=jnp.float32)

    @pl.when((k == num_k - 1) & (r == num_r - 1))
    def _finalize():
        out = acc_ref[...]
        if apply_relu:
            out = jnp.maximum(out, 0.0)
        o_ref[...] = out.astype(o_ref.dtype)


def rgcn_aggregate(a_bf16, p, comp, mask, *, num_bases, node_tile,
                   use_self_loop, apply_relu, out_dtype=jnp.float32):
    """out = relu( sum_r A[r] @ (sum_b comp[r,b] * P[b]) + P[num_bases] )."""
    num_rels, n_pad, _ = a_bf16.shape
    d_pad = p.shape[2]
    gi = n_pad // node_tile
    gk = n_pad // node_tile

    kernel = functools.partial(_rgcn_agg_kernel, num_bases=num_bases,
                               use_self_loop=use_self_loop, apply_relu=apply_relu)

    flops = (2 * num_rels * n_pad * n_pad * d_pad
             + 2 * num_rels * num_bases * n_pad * d_pad * gi)
    bytes_accessed = (num_rels * n_pad * n_pad * 2           # A (bf16)
                      + gi * num_bases * n_pad * d_pad * 4   # P re-reads (f32)
                      + 2 * n_pad * d_pad * 4)               # self term + output

    return pl.pallas_call(
        kernel,
        out_shape=jax.ShapeDtypeStruct((n_pad, d_pad), out_dtype),
        grid_spec=pltpu.PrefetchScalarGridSpec(
            num_scalar_prefetch=2,                 # mask (int32), comp (f32) -> SMEM
            grid=(gi, gk, num_rels),               # dst tiles | src tiles | relations
            in_specs=[
                pl.BlockSpec((None, node_tile, node_tile),
                             lambda i, k, r, *_: (r, i, k)),             # A[r] tile, bf16
                pl.BlockSpec((num_bases, node_tile, d_pad),
                             lambda i, k, r, *_: (0, k, 0)),             # P[:B], src tile
                pl.BlockSpec((None, node_tile, d_pad),
                             lambda i, k, r, *_: (num_bases, i, 0)),     # P[B] self, dst tile
            ],
            out_specs=pl.BlockSpec((node_tile, d_pad),
                                   lambda i, k, r, *_: (i, 0)),
            scratch_shapes=[pltpu.VMEM((node_tile, d_pad), jnp.float32)],
        ),
        compiler_params=pltpu.CompilerParams(
            dimension_semantics=("parallel", "arbitrary", "arbitrary"),
            vmem_limit_bytes=48 * 1024 * 1024),
        cost_estimate=pl.CostEstimate(flops=flops, transcendentals=0,
                                      bytes_accessed=bytes_accessed),
    )(mask, comp, a_bf16, p, p)


# ---------------------------------------------------------------------------
# Model
# ---------------------------------------------------------------------------
class BaseRGCNPallas:
    """JAX/Pallas port of BaseRGCN with basis-decomposed RelGraphConv hidden layers."""

    def __init__(self, key, num_nodes, h_dim, out_dim, num_rels, num_bases,
                 num_hidden_layers=1, dropout=0.0, use_self_loop=False):
        self.num_nodes = num_nodes
        self.h_dim = h_dim
        self.out_dim = out_dim
        self.num_rels = num_rels
        self.num_bases = num_rels if num_bases < 0 else num_bases
        self.num_hidden_layers = num_hidden_layers
        self.use_self_loop = use_self_loop
        # TODO(synk): dropout is a no-op here (inference semantics); training-mode
        # dropout would use pltpu.prng_* inside the aggregation kernel.

        # build_input_layer / build_output_layer return None in the base class,
        # so the stack is num_hidden_layers hidden layers of size h_dim -> h_dim.
        self.layers = []
        for _ in range(num_hidden_layers):
            key, k1, k2, k3 = jax.random.split(key, 4)
            bases = jax.random.normal(k1, (self.num_bases, h_dim, h_dim),
                                      jnp.float32) * (1.0 / jnp.sqrt(h_dim))
            comp = jax.random.normal(k2, (num_rels, self.num_bases), jnp.float32)
            w_self = jax.random.normal(k3, (h_dim, h_dim),
                                       jnp.float32) * (1.0 / jnp.sqrt(h_dim))
            self.layers.append((bases, comp, w_self))

    def forward(self, a, h):
        """a: (R, N, N) dense normalized adjacency (encodes g/r/norm); h: (N, D)."""
        num_rels, n, _ = a.shape
        d = h.shape[1]

        if num_rels == 0:   # degenerate graph: nothing to aggregate
            for _, _, w_self in self.layers:
                h = jnp.maximum(h @ w_self if self.use_self_loop
                                else jnp.zeros_like(h), 0.0)
            return h

        node_tile = _pick_node_tile(n)
        n_pad = _round_up(n, node_tile)
        d_pad = _round_up(d, 128)               # lane-dense feature dimension
        gi = n_pad // node_tile

        # Pad once, run all layers padded, slice at the end. Zero padding is
        # stable across layers (padded rows/cols stay exactly zero).
        a_pad = jnp.zeros((num_rels, n_pad, n_pad), jnp.float32)
        a_pad = a_pad.at[:, :n, :n].set(a.astype(jnp.float32))
        a_bf = a_pad.astype(jnp.bfloat16)       # feed the MXU bf16

        # Block-nonzero mask over (relation, dst-tile*src-tile) for tile skipping.
        blocks = a_pad.reshape(num_rels, gi, node_tile, gi, node_tile)
        mask = (jnp.abs(blocks).sum(axis=(2, 4)) > 0).astype(jnp.int32)
        mask = mask.reshape(num_rels, gi * gi)

        h_pad = jnp.zeros((n_pad, d_pad), jnp.float32).at[:n, :d].set(h)

        for bases, comp, w_self in self.layers:
            # Stack padded bases + W_self so a single projection kernel produces
            # P[b] = H @ bases[b] (b < B) and P[B] = H @ W_self.
            w_stk = jnp.zeros((self.num_bases + 1, d_pad, d_pad), jnp.float32)
            w_stk = w_stk.at[:self.num_bases, :d, :d].set(bases)
            w_stk = w_stk.at[self.num_bases, :d, :d].set(w_self)

            p = project_features(h_pad, w_stk, node_tile=node_tile)
            h_pad = rgcn_aggregate(a_bf, p, comp, mask,
                                   num_bases=self.num_bases,
                                   node_tile=node_tile,
                                   use_self_loop=self.use_self_loop,
                                   apply_relu=True)
        return h_pad[:n, :d]


def _reference_forward(model, a, h):
    """Pure-JAX f32 reference for correctness checking."""
    for bases, comp, w_self in model.layers:
        w = jnp.einsum("rb,bio->rio", comp, bases)
        msg = jnp.einsum("rds,sj,rjo->do", a, h, w)
        if model.use_self_loop:
            msg = msg + h @ w_self
        h = jnp.maximum(msg, 0.0)
    return h


if __name__ == "__main__":
    key = jax.random.PRNGKey(0)

    num_nodes = 16
    h_dim = 32
    num_rels = 4
    num_bases = 2
    num_hidden_layers = 2

    k_graph, k_feat, k_model = jax.random.split(key, 3)

    # Deterministic synthetic graph: dense per-relation adjacency with
    # in-degree normalization (this encodes g, r, norm of the PyTorch forward).
    edge_logits = jax.random.uniform(k_graph, (num_rels, num_nodes, num_nodes))
    adj_bin = (edge_logits > 0.7).astype(jnp.float32)
    in_deg = jnp.sum(adj_bin, axis=(0, 2), keepdims=True)          # (1, N, 1)
    norm = jnp.where(in_deg > 0, 1.0 / jnp.maximum(in_deg, 1.0), 0.0)
    a = adj_bin * norm                                              # (R, N, N)

    h0 = jax.random.normal(k_feat, (num_nodes, h_dim), jnp.float32)

    model = BaseRGCNPallas(k_model, num_nodes, h_dim, h_dim, num_rels,
                           num_bases, num_hidden_layers=num_hidden_layers,
                           dropout=0.0, use_self_loop=True)

    out = model.forward(a, h0)
    out = jax.block_until_ready(out)

    ref = _reference_forward(model, a, h0)
    assert out.shape == (num_nodes, h_dim)
    # bf16 MXU inputs with f32 accumulation: compare against the f32 reference
    # with bf16-level tolerance.
    assert jnp.allclose(out, ref, atol=1e-1, rtol=1e-1), "mismatch vs reference"

    print("KERNEL_OK")
</pallas_src>

<mosaic_0001>
module attributes {stable_mosaic.version = 11 : i64} {
  func.func @_project_kernel(%arg0: i32, %arg1: i32, %arg2: memref<128x128xbf16, #tpu.memory_space<vmem>>, %arg3: memref<1x128x128xbf16, #tpu.memory_space<vmem>>, %arg4: memref<1x128x128xf32, #tpu.memory_space<vmem>>) attributes {dimension_semantics = [#tpu.dimension_semantics<parallel>, #tpu.dimension_semantics<parallel>], iteration_bounds = array<i64: 3, 1>, scalar_prefetch = 0 : i64, scratch_operands = 0 : i64, tpu.core_type = #tpu.core_type<tc>, window_params = [{transform_indices = @transform_0, window_bounds = array<i64: 128, 128>}, {transform_indices = @transform_1, window_bounds = array<i64: 1, 128, 128>}, {transform_indices = @transform_2, window_bounds = array<i64: 1, 128, 128>}]} {
    %c0 = arith.constant 0 : index
    %c0_0 = arith.constant 0 : index
    %0 = vector.load %arg2[%c0, %c0_0] : memref<128x128xbf16, #tpu.memory_space<vmem>>, vector<128x128xbf16>
    %c0_1 = arith.constant 0 : index
    %c0_2 = arith.constant 0 : index
    %c0_3 = arith.constant 0 : index
    %1 = vector.load %arg3[%c0_1, %c0_2, %c0_3] : memref<1x128x128xbf16, #tpu.memory_space<vmem>>, vector<1x128x128xbf16>
    %2 = vector.shape_cast %1 : vector<1x128x128xbf16> to vector<128x128xbf16>
    %cst = arith.constant dense<0.000000e+00> : vector<128x128xf32>
    %3 = tpu.matmul %0, %2, %cst {dimension_numbers = #tpu.dot_dimension_numbers<[1], [0], [0], [1], [0, 0, 1, 1], [], []>} : vector<128x128xbf16>, vector<128x128xbf16>, vector<128x128xf32> -> vector<128x128xf32>
    %c0_4 = arith.constant 0 : index
    %c0_5 = arith.constant 0 : index
    %c0_6 = arith.constant 0 : index
    %4 = vector.load %arg4[%c0_4, %c0_5, %c0_6] : memref<1x128x128xf32, #tpu.memory_space<vmem>>, vector<1x128x128xf32>
    %5 = vector.shape_cast %4 : vector<1x128x128xf32> to vector<128x128xf32>
    %6 = vector.shape_cast %3 : vector<128x128xf32> to vector<1x128x128xf32>
    tpu.vector_store %arg4[%c0_4, %c0_5, %c0_6], %6 {strides = array<i32>} : memref<1x128x128xf32, #tpu.memory_space<vmem>>, vector<1x128x128xf32>,
    return
  }
  func.func @transform_0(%arg0: i32, %arg1: i32) -> (i32, i32) {
    %c0_i32 = arith.constant 0 : i32
    %c0_i32_0 = arith.constant 0 : i32
    return %arg1, %c0_i32 : i32, i32
  }
  func.func @transform_1(%arg0: i32, %arg1: i32) -> (i32, i32, i32) {
    %c0_i32 = arith.constant 0 : i32
    %c0_i32_0 = arith.constant 0 : i32
    %c0_i32_1 = arith.constant 0 : i32
    return %arg0, %c0_i32, %c0_i32_0 : i32, i32, i32
  }
  func.func @transform_2(%arg0: i32, %arg1: i32) -> (i32, i32, i32) {
    %c0_i32 = arith.constant 0 : i32
    %c0_i32_0 = arith.constant 0 : i32
    return %arg0, %arg1, %c0_i32 : i32, i32, i32
  }
}

</mosaic_0001>

<bundles_post_ra>
// kernel: tpu_custom_call.1
= control target key start
LH: loop header
LB: loop body
LE: loop exit
PB: predicated region body
PF: predicated region fallthrough
CT: control target
= control target key end

     0   :  { %7 = vsyncpa [#allocation3], 0  ;;  %s1170_s0 = inlined_call_operand.hbm [shape: bf16[128,128], index: 0, kind: input, shape index: {}]   ;;  %s1171_s1 = inlined_call_operand.hbm [shape: bf16[3,128,128], index: 1, kind: input, shape index: {}]   ;;  %s1172_s2 = inlined_call_operand.hbm [shape: f32[3,128,128], index: 2, kind: output, shape index: {}]  }
   0x1   :  { %8 = vsyncpa [#allocation6], 0 }
   0x2   :  { %10 = vsyncpa [#allocation6 + $0x1], 0 }
   0x3   :  { %11 = vsyncpa [#allocation4], 0 }
   0x4   :  { %13 = vsyncpa [#allocation4 + $0x1], 0  ;;  %s917_s9 = smov 0   ;;  %s919_s10 = smov 0  }
   0x5   :  { %s921_s11 = smov 0   ;;  %s923_s12 = smov 0  }
   0x6   :  { %s925_s13 = smov 0   ;;  %s927_s14 = smov 0  }
   0x7 LB: > { %s557_s15 = sadd.s32 4294967295, %s893_s14   ;;  %s558_s16 = sadd.s32 4294967294, %s893_s14   ;;  %s893_s14 = sphi %s927_s14, %s19_s14   ;;  %s889_s13 = sphi %s925_s13, %s1195_s13   ;;  %s885_s12 = sphi %s923_s12, %s1194_s12   ;;  %s881_s11 = sphi %s921_s11, %s1193_s11   ;;  %s877_s10 = sphi %s919_s10, %s1192_s10   ;;  %s873_s9 = sphi %s917_s9, %s1191_s9  }
   0x8   : > { %p77_p0 = scmp.ne.s32.totalorder %s877_s10, %s873_s9  ;;  %p951_p1 = scmp.eq.s32.totalorder %s557_s15, 0 }
   0x9   : > { %p955_p2 = scmp.eq.s32.totalorder %s557_s15, 2  ;;  %p109_p3 = scmp.eq.s32.totalorder %s558_s16, 2 }
   0xa   : > { %s1177_s17 = scalar_select %p951_p1, 1, 0 }
   0xb   : > { %s1178_s18 = scalar_select %p955_p2, 1, 0 }
   0xc   : > { %p961_p4 = por %p951_p1, %p77_p0  ;;  %p559_p5 = scmp.ge.s32.totalorder %s893_s14, 1 }
   0xd   : > { %p966_p6 = por %p109_p3, %p77_p0  ;;  %p116_p7 = scmp.lt.s32.totalorder %s893_s14, 4 }
   0xe   : > { %s1179_s19 = scalar_select %p961_p4, 1, 0 }
   0xf   : > { %s1180_s20 = scalar_select %p966_p6, 1, 0 }
  0x10   : > { %p971_p8 = pnand %p559_p5, %p116_p7  ;;  %s895_s22 = smov [#allocation2]  }
  0x11   : > { %s131_s23 = sshll.u32 %s895_s22, 4  ;;  %s31_s25 = sadd.s32 1, %s889_s13  ;;  %s132_s23 = int_to_ptr.vmem [resolvable:$true] %s131_s23 }
  0x12   : > { %s1181_s21 = scalar_select %p971_p8, 1, 0 }
  0x13   : > { %p664_p9 = pneg %p971_p8  ;;  %s749_s28 = scalar_lea.hbm %s1170_s0, 1024 }
  0x14   : > { %p750_p11 = scmp.ne.s32.totalorder %s1170_s0, %s749_s28  ;;  %p756_p3 = scmp.lt.u32.totalorder %s749_s28, %s1170_s0 }
  0x15   : > { %p979_p10 = pnand %p664_p9, %p951_p1 }
  0x17   : > { %p751_p12 = pneg %p979_p10 }
  0x19   : > { %p752_p13 = pnand %p751_p12, %p750_p11 }
  0x1b   : > { %p753_p0 = pneg %p752_p13 }
  0x1d   : > { %p758_p5 = pnand %p756_p3, %p753_p0 }
  0x1f   : > { %761 = shalt.err (!%p758_p5)
}
  0x20   : > { %s762_s5 = scalar_lea.vmem %s132_s23, 1024  ;;  %p770_p4 = scmp.lt.s32.totalorder %s132_s23, %s132_s23 }
  0x21   : > { %p763_p7 = scmp.ne.s32.totalorder %s132_s23, %s762_s5  ;;  %p771_p1 = scmp.lt.s32.totalorder %s762_s5, %s762_s5 }
  0x23   : > { %p765_p9 = pnand %p763_p7, %p751_p12  ;;  %p772_p8 = por %p771_p1, %p770_p4 }
  0x25   : > { %p766_p6 = pneg %p765_p9 }
  0x27   : > { %p773_p2 = pnand %p772_p8, %p766_p6 }
  0x29   : > { %776 = shalt.err (!%p773_p2)
}
  0x2a   : > { %s896_s6 = smov 64   ;;  %s897_s7 = smov 4  }
  0x2b   : > { %667 = dma.hbm_to_vmem [thread:$0]  (!%p979_p10), %s1170_s0, 1024, %s132_s23, [#allocation3], %s896_s6, %s896_s6, %s897_s7  }
  0x2c   : > { %p33_p1 = scmp.ge.s32.totalorder %s31_s25, 3  ;;  %s64_s16 = sadd.s32 1, %s881_s11 }
  0x2d   : > { %p71_p2 = scmp.ne.s32.totalorder %s881_s11, %s877_s10  ;;  %p72_p4 = scmp.eq.s32.totalorder %s893_s14, 0 }
  0x2e   : > { %s1197_s25 = smov (%p33_p1, %s31_s25), 0  ;;  %p1184_p8 = scmp.ne.s32.totalorder %s1178_s18, 0 }
  0x2f   : > { %p1009_p6 = por %p72_p4, %p71_p2  ;;  %s61_s26 = ssub.s32 %s889_s13, %s1197_s25 }
  0x30   : > { %p1015_p11 = por %p1184_p8, %p71_p2  ;;  %p677_p12 = scmp.lt.s32.totalorder %s893_s14, 3 }
  0x31   : > { %p62_p10 = scmp.eq.s32.totalorder %s61_s26, 0  ;;  %s145_s23 = sand.u32 1, %s881_s11  }
  0x32   : > { %s562_s27 = sshll.u32 %s145_s23, 6  ;;  %s590_s29 = sshll.u32 %s889_s13, 10 }
  0x33   : > { %s1024_s28 = scalar_select %p62_p10, %s881_s11, %s64_s16  }
  0x34   : > { %s1030_s4 = scalar_lea.hbm %s1171_s1, %s590_s29  ;;  %s149_s18 = scalar_lea.vmem [#allocation5], %s562_s27 }
  0x35   : > { %s156_s5 = sshll.u32 %s149_s18, 4  ;;  %p1036_p13 = pnand %p677_p12, %p1009_p6  ;;  %s1032_s5 = int_to_ptr.vmem [resolvable:$true] %s156_s5 }
  0x36   : > { %s1040_s15 = scalar_lea.sflag [#allocation6], %s145_s23  ;;  %s777_s16 = scalar_lea.hbm %s1030_s4, 1024 }
  0x37   : > { %p778_p0 = scmp.ne.s32.totalorder %s1030_s4, %s777_s16  ;;  %p779_p3 = pneg %p1036_p13 }
  0x38   : > { %s782_s22 = scalar_lea.hbm %s1171_s1, 3072  ;;  %p783_p9 = scmp.lt.u32.totalorder %s1030_s4, %s1171_s1 }
  0x39   : > { %p780_p5 = pnand %p779_p3, %p778_p0  ;;  %p784_p1 = scmp.lt.u32.totalorder %s782_s22, %s777_s16 }
  0x3a   : > { %p786_p4 = scmp.lt.u32.totalorder %s777_s16, %s1030_s4 }
  0x3b   : > { %p781_p7 = pneg %p780_p5  ;;  %p785_p2 = por %p784_p1, %p783_p9 }
  0x3d   : > { %p787_p6 = por %p786_p4, %p785_p2 }
  0x3f   : > { %p788_p8 = pnand %p787_p6, %p781_p7 }
  0x41   : > { %791 = shalt.err (!%p788_p8)
}
  0x42   : > { %s792_s23 = scalar_lea.vmem %s1032_s5, 1024  ;;  %s898_s3 = smov [#allocation5]  }
  0x43   : > { %p793_p12 = scmp.ne.s32.totalorder %s1032_s5, %s792_s23  ;;  %s797_s18 = sshll.u32 %s898_s3, 4  ;;  %s798_s18 = int_to_ptr.vmem [resolvable:$false] %s797_s18 }
  0x44   : > { %s799_s26 = scalar_lea.vmem %s798_s18, 2048  ;;  %p800_p5 = scmp.lt.s32.totalorder %s1032_s5, %s798_s18 }
  0x45   : > { %p795_p10 = pnand %p793_p12, %p779_p3  ;;  %p801_p9 = scmp.lt.s32.totalorder %s799_s26, %s792_s23 }
  0x47   : > { %p796_p0 = pneg %p795_p10  ;;  %p802_p1 = por %p801_p9, %p800_p5 }
  0x49   : > { %p803_p2 = pnand %p802_p1, %p796_p0 }
  0x4b   : > { %806 = shalt.err (!%p803_p2)
}
  0x4c   : > { %671 = dma.hbm_to_vmem [thread:$0]  (!%p1036_p13), %s1030_s4, 1024, %s1032_s5, %s1040_s15, %s896_s6, %s896_s6, %s897_s7  }
  0x4d   : > { %p1187_p3 = scmp.ne.s32.totalorder %s1181_s21, 0 }
  0x4e   : > { %p1188_p7 = scmp.ne.s32.totalorder (!%p1187_p3), %s1177_s17, 0 }
  0x4f   : > { %168 = sbr.rel (%p1187_p3) target bundleno = 362 (0x16a), region = 28 }
  0x56   : > { %860 = dma.done.wait (%p1188_p7), [#allocation3], 1024  }
  0x57   : > { %862 = vsyncadd (%p1188_p7), [#allocation3], 4294966272  ;;  %s1078_s16 = sand.u32 1, %s877_s10   ;;  %p1189_p13 = scmp.ne.s32.totalorder %s1179_s19, 0 }
  0x58   : > { %s567_s8 = sshll.u32 %s1078_s16, 6  ;;  %s175_s27 = scalar_lea.sflag [#allocation6], %s1078_s16 }
  0x59   : > { %s1082_s22 = scalar_lea.vmem [#allocation5], %s567_s8 }
  0x5a   : > { %864 = dma.done.wait (%p1189_p13), %s175_s27, 1024  }
  0x5b   : > { %866 = vsyncadd (%p1189_p13), %s175_s27, 4294966272  ;;  %v733_v0 = vld [vmem:[%s1082_s22] sm:$0xff]   ;;  %v734_v1 = vld [vmem:[%s1082_s22 + $0x8] sm:$0xff]   ;;  %s568_s17 = sshll.u32 %s1078_s16, 7  ;;  %s591_s21 = sshll.u32 %s885_s12, 11 }
  0x5c   : > { %608 = vmatprep.subr.bf16.mxu0 %v733_v0  ;;  %640 = vmatprep.subr.bf16.mxu1 %v733_v0  ;;  %v735_v2 = vld [vmem:[%s1082_s22 + $0x10] sm:$0xff]   ;;  %v736_v3 = vld [vmem:[%s1082_s22 + $0x18] sm:$0xff]   ;;  %v741_v4 = vld [vmem:[#allocation2] sm:$0xff]   ;;  %s1097_s19 = scalar_lea.vmem [#allocation7], %s568_s17  ;;  %s1114_s5 = scalar_lea.hbm %s1172_s2, %s591_s21 }
  0x5d   : > { %609 = vmatpush3.bf16.msra.mxu0 %v733_v0  ;;  %648 = vmatpush3.bf16.msra.mxu1 %v733_v0  ;;  %v742_v5 = vld [vmem:[#allocation2 + $0x20] sm:$0xff]   ;;  %v738_v7 = vld [vmem:[%s1082_s22 + $0x28] sm:$0xff]   ;;  %v739_v8 = vld [vmem:[%s1082_s22 + $0x30] sm:$0xff]   ;;  %s459_s6 = sshll.u32 %s1097_s19, 4  ;;  %s444_s12 = scalar_lea.sflag [#allocation4], %s1078_s16  ;;  %s1116_s6 = int_to_ptr.vmem [resolvable:$true] %s459_s6 }
  0x5e   : > { %610 = vmatprep.subr.bf16.mxu0 %v734_v1  ;;  %641 = vmatprep.subr.bf16.mxu1 %v734_v1  ;;  %v737_v6 = vld [vmem:[%s1082_s22 + $0x20] sm:$0xff]   ;;  %v740_v9 = vld [vmem:[%s1082_s22 + $0x38] sm:$0xff]   ;;  %v743_v10 = vld [vmem:[#allocation2 + $0x8] sm:$0xff]   ;;  %s807_s15 = scalar_lea.vmem %s1116_s6, 2048  ;;  %s899_s29 = smov [#allocation7]  }
  0x5f   : > { %624 = vmatprep.mubr.bf16.mxu0 %v741_v4  ;;  %632 = vmatprep.mubr.bf16.mxu1 %v742_v5  ;;  %v744_v11 = vld [vmem:[#allocation2 + $0x28] sm:$0xff]   ;;  %v745_v12 = vld [vmem:[#allocation2 + $0x10] sm:$0xff]   ;;  %v747_v14 = vld [vmem:[#allocation2 + $0x18] sm:$0xff]   ;;  %p808_p4 = scmp.ne.s32.totalorder %s1116_s6, %s807_s15  ;;  %s811_s30 = sshll.u32 %s899_s29, 4  ;;  %s812_s30 = int_to_ptr.vmem [resolvable:$false] %s811_s30 }
  0x60   : > { %v746_v13 = vld [vmem:[#allocation2 + $0x30] sm:$0xff]   ;;  %v748_v15 = vld [vmem:[#allocation2 + $0x38] sm:$0xff]   ;;  %s813_s23 = scalar_lea.vmem %s812_s30, 4096  ;;  %p814_p12 = scmp.lt.s32.totalorder %s1116_s6, %s812_s30 }
  0x61   : > { %611 = vmatpush3.bf16.msra.mxu0 %v734_v1  ;;  %649 = vmatpush3.bf16.msra.mxu1 %v734_v1  ;;  %p809_p6 = pnand %p808_p4, %p1015_p11  ;;  %p815_p10 = scmp.lt.s32.totalorder %s813_s23, %s807_s15 }
  0x62   : > { %612 = vmatprep.subr.bf16.mxu0 %v735_v2  ;;  %642 = vmatprep.subr.bf16.mxu1 %v735_v2 }
  0x63   : > { %p810_p8 = pneg %p809_p6  ;;  %p816_p0 = por %p815_p10, %p814_p12 }
  0x65   : > { %613 = vmatpush3.bf16.msra.mxu0 %v735_v2  ;;  %650 = vmatpush3.bf16.msra.mxu1 %v735_v2  ;;  %p817_p5 = pnand %p816_p0, %p810_p8 }
  0x66   : > { %614 = vmatprep.subr.bf16.mxu0 %v736_v3  ;;  %643 = vmatprep.subr.bf16.mxu1 %v736_v3 }
  0x69   : > { %615 = vmatpush3.bf16.msra.mxu0 %v736_v3  ;;  %651 = vmatpush3.bf16.msra.mxu1 %v736_v3 }
  0x6a   : > { %616 = vmatprep.subr.bf16.mxu0 %v737_v6  ;;  %644 = vmatprep.subr.bf16.mxu1 %v737_v6 }
  0x6d   : > { %617 = vmatpush3.bf16.msra.mxu0 %v737_v6  ;;  %652 = vmatpush3.bf16.msra.mxu1 %v737_v6 }
  0x6e   : > { %618 = vmatprep.subr.bf16.mxu0 %v738_v7  ;;  %645 = vmatprep.subr.bf16.mxu1 %v738_v7 }
  0x71   : > { %619 = vmatpush3.bf16.msra.mxu0 %v738_v7  ;;  %653 = vmatpush3.bf16.msra.mxu1 %v738_v7 }
  0x72   : > { %620 = vmatprep.subr.bf16.mxu0 %v739_v8  ;;  %646 = vmatprep.subr.bf16.mxu1 %v739_v8 }
  0x75   : > { %621 = vmatpush3.bf16.msra.mxu0 %v739_v8  ;;  %654 = vmatpush3.bf16.msra.mxu1 %v739_v8 }
  0x76   : > { %622 = vmatprep.subr.bf16.mxu0 %v740_v9  ;;  %647 = vmatprep.subr.bf16.mxu1 %v740_v9 }
  0x79   : > { %623 = vmatpush3.bf16.msra.mxu0 %v740_v9  ;;  %655 = vmatpush3.bf16.msra.mxu1 %v740_v9 }
  0x7c   : > { %625 = vmatmul.mubr.bf16.vlgmr.msra.gmra.mrb[0].mxu0 %v743_v10  ;;  %633 = vmatmul.mubr.bf16.vlgmr.msra.gmra.mrb[0].mxu1 %v744_v11 }
  0x7d   : > { %628 = vmatprep.mubr.bf16.mxu0 %v745_v12  ;;  %636 = vmatprep.mubr.bf16.mxu1 %v746_v13 }
  0x84   : > { %629 = vmatmul.mubr.bf16.gmra.mrb[4].mxu0 %v747_v14  ;;  %637 = vmatmul.mubr.bf16.gmra.mrb[4].mxu1 %v748_v15 }
 0x14f   : > { %v626_v16 = vpop.f32.mrb[0].mxu0  ;;  %v634_v17 = vpop.f32.mrb[0].mxu1 }
 0x150   : > { %429 = vst [vmem:[%s1097_s19 + $0x10] sm:$0xff] %v626_v16  ;;  %437 = vst [vmem:[%s1097_s19 + $0x50] sm:$0xff] %v634_v17  ;;  %v364_v18 = vpop.f32.mrb[1].mxu0  ;;  %v396_v19 = vpop.f32.mrb[1].mxu1 }
 0x151   : > { %427 = vst [vmem:[%s1097_s19] sm:$0xff] %v364_v18  ;;  %435 = vst [vmem:[%s1097_s19 + $0x40] sm:$0xff] %v396_v19  ;;  %v627_v20 = vpop.f32.mrb[2].mxu0  ;;  %v635_v21 = vpop.f32.mrb[2].mxu1 }
 0x152   : > { %430 = vst [vmem:[%s1097_s19 + $0x18] sm:$0xff] %v627_v20  ;;  %438 = vst [vmem:[%s1097_s19 + $0x58] sm:$0xff] %v635_v21  ;;  %v367_v22 = vpop.f32.mrb[3].mxu0  ;;  %v399_v23 = vpop.f32.mrb[3].mxu1 }
 0x153   : > { %428 = vst [vmem:[%s1097_s19 + $0x8] sm:$0xff] %v367_v22  ;;  %436 = vst [vmem:[%s1097_s19 + $0x48] sm:$0xff] %v399_v23 }
 0x157   : > { %v630_v24 = vpop.f32.mrb[4].mxu0  ;;  %v638_v25 = vpop.f32.mrb[4].mxu1 }
 0x158   : > { %433 = vst [vmem:[%s1097_s19 + $0x30] sm:$0xff] %v630_v24  ;;  %441 = vst [vmem:[%s1097_s19 + $0x70] sm:$0xff] %v638_v25  ;;  %v380_v26 = vpop.f32.mrb[5].mxu0  ;;  %v412_v27 = vpop.f32.mrb[5].mxu1 }
 0x159   : > { %431 = vst [vmem:[%s1097_s19 + $0x20] sm:$0xff] %v380_v26  ;;  %439 = vst [vmem:[%s1097_s19 + $0x60] sm:$0xff] %v412_v27  ;;  %v631_v28 = vpop.f32.mrb[6].mxu0  ;;  %v639_v29 = vpop.f32.mrb[6].mxu1 }
 0x15a   : > { %434 = vst [vmem:[%s1097_s19 + $0x38] sm:$0xff] %v631_v28  ;;  %442 = vst [vmem:[%s1097_s19 + $0x78] sm:$0xff] %v639_v29  ;;  %v383_v30 = vpop.f32.mrb[7].mxu0  ;;  %v415_v31 = vpop.f32.mrb[7].mxu1 }
 0x15b   : > { %432 = vst [vmem:[%s1097_s19 + $0x28] sm:$0xff] %v383_v30  ;;  %440 = vst [vmem:[%s1097_s19 + $0x68] sm:$0xff] %v415_v31 }
 0x15c   : > { %820 = shalt.err (!%p817_p5)
}
 0x15d   : > { %s821_s3 = scalar_lea.hbm %s1114_s5, 2048  ;;  %s825_s8 = scalar_lea.hbm %s1172_s2, 6144 }
 0x15e   : > { %p822_p9 = scmp.ne.s32.totalorder %s1114_s5, %s821_s3  ;;  %p826_p3 = scmp.lt.u32.totalorder %s1114_s5, %s1172_s2 }
 0x15f   : > { %p827_p7 = scmp.lt.u32.totalorder %s825_s8, %s821_s3  ;;  %p829_p4 = scmp.lt.u32.totalorder %s821_s3, %s1114_s5 }
 0x160   : > { %p823_p1 = pnand %p822_p9, %p1015_p11 }
 0x161   : > { %p828_p13 = por %p827_p7, %p826_p3 }
 0x162   : > { %p824_p2 = pneg %p823_p1 }
 0x163   : > { %p830_p6 = por %p829_p4, %p828_p13 }
 0x165   : > { %p831_p8 = pnand %p830_p6, %p824_p2 }
 0x167   : > { %834 = shalt.err (!%p831_p8)
}
 0x168   : > { %s900_s17 = smov 128   ;;  %s901_s19 = smov 8  }
 0x169   : > { %662 = dma.vmem_to_hbm [thread:$0]  (%p1015_p11), %s1116_s6, 2048, %s1114_s5, %s444_s12, %s900_s17, %s900_s17, %s901_s19  }
 0x16a PF: > { %p679_p12 = scmp.ge.s32.totalorder %s893_s14, 2  ;;  %s474_s21 = sand.u32 1, %s873_s9  }
 0x16b   : > { %p1190_p10 = scmp.ne.s32.totalorder %s1180_s20, 0  ;;  %s475_s7 = scalar_lea.sflag [#allocation4], %s474_s21 }
 0x16d   : > { %p673_p0 = pnand %p679_p12, %p1190_p10 }
 0x16f   : > { %868 = dma.done.wait (!%p673_p0), %s475_s7, 2048  }
 0x170   : > { %870 = vsyncadd (!%p673_p0), %s475_s7, 4294965248  ;;  %s19_s14 = sadd.s32 1, %s893_s14   ;;  %s1191_s9 = smov %s877_s10 }
 0x171   : > { %p16_p5 = scmp.ge.s32.totalorder %s19_s14, 5   ;;  %s1192_s10 = smov %s881_s11 }
 0x172   : > { %s1193_s11 = smov %s1024_s28  ;;  %s1194_s12 = smov %s889_s13 }
 0x173   : > { %s1195_s13 = smov %s1197_s25  ;;  %18 = sbr.rel (!%p16_p5) target bundleno = 7 (0x7), region = 79 }
 0x17a   :  { %480 = vsyncpa [#allocation3], 1 }
 0x17b   :  { %482 = vsyncpa [#allocation3 + $0x1], 1 }
 0x17c   :  { %483 = vsyncpa [#allocation6], 1 }
 0x17d   :  { %485 = vsyncpa [#allocation6 + $0x1], 1 }
 0x17e   :  { %486 = vsyncpa [#allocation4], 1 }
 0x17f   :  { %488 = vsyncpa [#allocation4 + $0x1], 1 }

</bundles_post_ra>
